<compile_context>
chip_gen: v7x
topology: tpu7x:2x2x1
jax: 0.10.0
libtpu: 0.0.40
codegen_flags: <defaults>
</compile_context>

<pallas_src>
import functools
import math

import jax
import jax.numpy as jnp
from jax import lax
from jax.experimental import pallas as pl
from jax.experimental.pallas import tpu as pltpu

_SUBLANE = 8
_LANE = 128
_MAX_BLOCK_ROWS = 256   # multiple of 16 (two sublane-aligned halves per block)
_MAX_BLOCK_COLS = 512   # multiple of 128; 256*512*4 B = 512 KiB/block << VMEM

# Hash constants (written as signed 32-bit so everything stays int32).
_M1 = 0x7FEB352D              # 2145916205
_M2 = 0x846CA68B - (1 << 32)  # -2073147765
_S1 = 0x9E3779B9 - (1 << 32)  # -1640531527
_S2 = 0xBB67AE85 - (1 << 32)  # -1150833019
_ONE_BITS = 0x3F800000        # float32 1.0


def _round_up(x: int, m: int) -> int:
    return ((x + m - 1) // m) * m


def _shr(x, n: int):
    """Logical right shift on int32, emulated with arithmetic shift + mask."""
    mask = (1 << (32 - n)) - 1
    return (x >> n) & jnp.int32(mask)


def _mix(x):
    """Murmur3-style 32-bit finalizer (bijective avalanche mix)."""
    x = x ^ _shr(x, 16)
    x = x * jnp.int32(_M1)
    x = x ^ _shr(x, 15)
    x = x * jnp.int32(_M2)
    x = x ^ _shr(x, 16)
    return x


def _bits_to_unit(bits):
    """23 random mantissa bits -> float32 in [0, 1)."""
    f_bits = _shr(bits, 9) | jnp.int32(_ONE_BITS)
    return lax.bitcast_convert_type(f_bits, jnp.float32) - 1.0


def _bongard_logits_kernel(seed_ref, o_ref):
    """Fill one lane-dense (block_rows, block_cols) f32 tile with N(0, 1).

    Uses a counter-based hash PRNG + paired Box-Muller: the top half of the
    block gets r*cos(theta), the bottom half r*sin(theta) (2 transcendentals
    per output element).
    """
    rows, cols = o_ref.shape
    half = rows // 2

    # Unique pair-counter per element of this block's top half.
    block_id = pl.program_id(0) * pl.num_programs(1) + pl.program_id(1)
    base = block_id * (half * cols)
    row = lax.broadcasted_iota(jnp.int32, (half, cols), 0)
    col = lax.broadcasted_iota(jnp.int32, (half, cols), 1)
    ctr = base + row * cols + col

    k0 = seed_ref[0]
    k1 = seed_ref[1]

    b1 = _mix(_mix((ctr ^ k0) ^ jnp.int32(_S1)) + k1)
    b2 = _mix(_mix((ctr ^ k1) ^ jnp.int32(_S2)) + k0)

    # TODO(synk): uniforms use 23 mantissa bits, so |z| is capped at ~5.65
    # sigma relative to torch.randn (fine for this dummy head).
    u1 = 1.0 - _bits_to_unit(b1)          # (0, 1] -> log-safe
    u2 = _bits_to_unit(b2)                # [0, 1)

    r = jnp.sqrt(-2.0 * jnp.log(u1))
    theta = (2.0 * math.pi) * u2
    o_ref[0:half, :] = r * jnp.cos(theta)
    o_ref[half:rows, :] = r * jnp.sin(theta)


def _key_to_seed_words(key):
    """Fold a JAX PRNG key (typed or legacy uint32) into two int32 words."""
    if jnp.issubdtype(key.dtype, jax.dtypes.prng_key):
        kd = jax.random.key_data(key)
    else:
        kd = key
    kd = jnp.asarray(kd, jnp.uint32).reshape(-1)
    w0 = kd[0]
    w1 = kd[1] if kd.shape[0] > 1 else jnp.uint32(0)
    for i in range(2, kd.shape[0]):       # static fold for wider key formats
        if i % 2 == 0:
            w0 = w0 ^ kd[i]
        else:
            w1 = w1 ^ kd[i]
    return lax.bitcast_convert_type(jnp.stack([w0, w1]), jnp.int32)


@functools.partial(jax.jit, static_argnames=("batch", "num_classes"))
def _sample_bongard_logits(key, *, batch: int, num_classes: int):
    """torch.randn(batch, num_classes) equivalent; one fused executable."""
    seed = _key_to_seed_words(key)

    padded_b = _round_up(max(batch, 1), 2 * _SUBLANE)       # even halves, 8-aligned
    padded_c = _round_up(max(num_classes, 1), _LANE)
    block_b = min(padded_b, _MAX_BLOCK_ROWS)
    block_c = min(padded_c, _MAX_BLOCK_COLS)
    padded_b = _round_up(padded_b, block_b)
    padded_c = _round_up(padded_c, block_c)
    grid = (padded_b // block_b, padded_c // block_c)

    n = padded_b * padded_c
    out = pl.pallas_call(
        _bongard_logits_kernel,
        out_shape=jax.ShapeDtypeStruct((padded_b, padded_c), jnp.float32),
        grid=grid,
        in_specs=[pl.BlockSpec(memory_space=pltpu.MemorySpace.SMEM)],
        out_specs=pl.BlockSpec((block_b, block_c), lambda i, j: (i, j)),
        compiler_params=pltpu.CompilerParams(
            dimension_semantics=("parallel", "parallel")),
        cost_estimate=pl.CostEstimate(
            flops=32 * n,            # integer hash + Box-Muller arithmetic
            transcendentals=2 * n,   # (log + sqrt + cos + sin) per pair
            bytes_accessed=4 * n + 8,
        ),
    )(seed)
    # Lazy de-pad inside the same jit: fuses with the kernel's output, no
    # extra eager slice launch.
    return out[:batch, :num_classes]


class PerceptionModulePallas:
    """JAX/Pallas mirror of the dummy PyTorch PerceptionModule."""

    def __init__(self, config):
        self.config = config
        self.num_classes = config["model"]["bongard_head_config"]["num_classes"]
        # Set2Set(node_feature_dim=1280) -> output_size = 2 * 1280
        self.set2set_output_size = 2 * 1280

    def __call__(self, image_input: jax.Array, key: jax.Array, is_synthetic: bool = False):
        # Only the batch dim of the image is used; no data dependency on the
        # image tensor (matches torch.randn(image_input.shape[0], ...)).
        batch = image_input.shape[0]
        bongard_logits = _sample_bongard_logits(
            key, batch=batch, num_classes=self.num_classes)

        # TODO(synk): torch.long placeholders are represented as int32 (no
        # native int64 on TPU).
        empty_f = jnp.zeros((0,), jnp.float32)
        empty_i = jnp.zeros((0,), jnp.int32)
        attr_keys = ("fill", "color", "size", "orientation", "shape", "texture")

        aggregated_outputs = {
            "attribute_logits": {k: empty_f for k in attr_keys},
            "attribute_gt": {k: empty_i for k in attr_keys},
            "relation_logits": empty_f,
            "relation_gt": empty_i,
            "bongard_labels": empty_i,
            "image_features_student": jnp.zeros((0, self.set2set_output_size), jnp.float32),
            "image_features_teacher": jnp.zeros((0, self.set2set_output_size), jnp.float32),
            "bongard_logits": bongard_logits,
        }
        symbolic_outputs_batch = []
        return symbolic_outputs_batch, aggregated_outputs


if __name__ == "__main__":
    key = jax.random.PRNGKey(0)
    k_img, k_rng = jax.random.split(key)

    config = {"model": {"bongard_head_config": {"num_classes": 2}}}
    module = PerceptionModulePallas(config)

    # Small NCHW image batch; the forward only ever reads its batch dimension.
    image_input = jax.random.normal(k_img, (2, 3, 16, 16), dtype=jnp.float32)

    symbolic_outputs, outputs = module(image_input, k_rng)
    logits = jax.block_until_ready(outputs["bongard_logits"])

    assert symbolic_outputs == []
    assert logits.shape == (2, 2)
    assert logits.dtype == jnp.float32
    assert bool(jnp.all(jnp.isfinite(logits)))
    assert outputs["relation_logits"].shape == (0,)
    assert outputs["image_features_student"].shape == (0, 2560)

    print("KERNEL_OK")
</pallas_src>

<mosaic_0001>
module attributes {stable_mosaic.version = 11 : i64} {
  func.func @_bongard_logits_kernel(%arg0: i32, %arg1: i32, %arg2: memref<2xi32, #tpu.memory_space<smem>>, %arg3: memref<16x128xf32, #tpu.memory_space<vmem>>) attributes {dimension_semantics = [#tpu.dimension_semantics<parallel>, #tpu.dimension_semantics<parallel>], iteration_bounds = array<i64: 1, 1>, scalar_prefetch = 0 : i64, scratch_operands = 0 : i64, tpu.core_type = #tpu.core_type<tc>, window_params = [{transform_indices = @transform_0, window_bounds = array<i64: 2>}, {transform_indices = @transform_1, window_bounds = array<i64: 16, 128>}]} {
    %c1_i32 = arith.constant 1 : i32
    %0 = arith.muli %arg0, %c1_i32 : i32
    %1 = arith.addi %0, %arg1 : i32
    %c1024_i32 = arith.constant 1024 : i32
    %2 = arith.muli %1, %c1024_i32 : i32
    %3 = tpu.iota {dimensions = array<i32: 0>} : vector<8x128xi32>
    %4 = tpu.iota {dimensions = array<i32: 1>} : vector<8x128xi32>
    %c128_i32 = arith.constant 128 : i32
    %5 = vector.broadcast %c128_i32 : i32 to vector<8x128xi32>
    %6 = arith.muli %3, %5 : vector<8x128xi32>
    %7 = vector.broadcast %2 : i32 to vector<8x128xi32>
    %8 = arith.addi %7, %6 : vector<8x128xi32>
    %9 = arith.addi %8, %4 : vector<8x128xi32>
    %c0 = arith.constant 0 : index
    %10 = memref.load %arg2[%c0] : memref<2xi32, #tpu.memory_space<smem>>
    %c1 = arith.constant 1 : index
    %11 = memref.load %arg2[%c1] : memref<2xi32, #tpu.memory_space<smem>>
    %12 = vector.broadcast %10 : i32 to vector<8x128xi32>
    %13 = arith.xori %9, %12 : vector<8x128xi32>
    %c-1640531527_i32 = arith.constant -1640531527 : i32
    %14 = vector.broadcast %c-1640531527_i32 : i32 to vector<8x128xi32>
    %15 = arith.xori %13, %14 : vector<8x128xi32>
    %c16_i32 = arith.constant 16 : i32
    %16 = vector.broadcast %c16_i32 : i32 to vector<8x128xi32>
    %17 = arith.shrsi %15, %16 : vector<8x128xi32>
    %c65535_i32 = arith.constant 65535 : i32
    %18 = vector.broadcast %c65535_i32 : i32 to vector<8x128xi32>
    %19 = arith.andi %17, %18 : vector<8x128xi32>
    %20 = arith.xori %15, %19 : vector<8x128xi32>
    %c2146121005_i32 = arith.constant 2146121005 : i32
    %21 = vector.broadcast %c2146121005_i32 : i32 to vector<8x128xi32>
    %22 = arith.muli %20, %21 : vector<8x128xi32>
    %c15_i32 = arith.constant 15 : i32
    %23 = vector.broadcast %c15_i32 : i32 to vector<8x128xi32>
    %24 = arith.shrsi %22, %23 : vector<8x128xi32>
    %c131071_i32 = arith.constant 131071 : i32
    %25 = vector.broadcast %c131071_i32 : i32 to vector<8x128xi32>
    %26 = arith.andi %24, %25 : vector<8x128xi32>
    %27 = arith.xori %22, %26 : vector<8x128xi32>
    %c-2073254261_i32 = arith.constant -2073254261 : i32
    %28 = vector.broadcast %c-2073254261_i32 : i32 to vector<8x128xi32>
    %29 = arith.muli %27, %28 : vector<8x128xi32>
    %c16_i32_0 = arith.constant 16 : i32
    %30 = vector.broadcast %c16_i32_0 : i32 to vector<8x128xi32>
    %31 = arith.shrsi %29, %30 : vector<8x128xi32>
    %c65535_i32_1 = arith.constant 65535 : i32
    %32 = vector.broadcast %c65535_i32_1 : i32 to vector<8x128xi32>
    %33 = arith.andi %31, %32 : vector<8x128xi32>
    %34 = arith.xori %29, %33 : vector<8x128xi32>
    %35 = vector.broadcast %11 : i32 to vector<8x128xi32>
    %36 = arith.addi %34, %35 : vector<8x128xi32>
    %c16_i32_2 = arith.constant 16 : i32
    %37 = vector.broadcast %c16_i32_2 : i32 to vector<8x128xi32>
    %38 = arith.shrsi %36, %37 : vector<8x128xi32>
    %c65535_i32_3 = arith.constant 65535 : i32
    %39 = vector.broadcast %c65535_i32_3 : i32 to vector<8x128xi32>
    %40 = arith.andi %38, %39 : vector<8x128xi32>
    %41 = arith.xori %36, %40 : vector<8x128xi32>
    %c2146121005_i32_4 = arith.constant 2146121005 : i32
    %42 = vector.broadcast %c2146121005_i32_4 : i32 to vector<8x128xi32>
    %43 = arith.muli %41, %42 : vector<8x128xi32>
    %c15_i32_5 = arith.constant 15 : i32
    %44 = vector.broadcast %c15_i32_5 : i32 to vector<8x128xi32>
    %45 = arith.shrsi %43, %44 : vector<8x128xi32>
    %c131071_i32_6 = arith.constant 131071 : i32
    %46 = vector.broadcast %c131071_i32_6 : i32 to vector<8x128xi32>
    %47 = arith.andi %45, %46 : vector<8x128xi32>
    %48 = arith.xori %43, %47 : vector<8x128xi32>
    %c-2073254261_i32_7 = arith.constant -2073254261 : i32
    %49 = vector.broadcast %c-2073254261_i32_7 : i32 to vector<8x128xi32>
    %50 = arith.muli %48, %49 : vector<8x128xi32>
    %c16_i32_8 = arith.constant 16 : i32
    %51 = vector.broadcast %c16_i32_8 : i32 to vector<8x128xi32>
    %52 = arith.shrsi %50, %51 : vector<8x128xi32>
    %c65535_i32_9 = arith.constant 65535 : i32
    %53 = vector.broadcast %c65535_i32_9 : i32 to vector<8x128xi32>
    %54 = arith.andi %52, %53 : vector<8x128xi32>
    %55 = arith.xori %50, %54 : vector<8x128xi32>
    %56 = vector.broadcast %11 : i32 to vector<8x128xi32>
    %57 = arith.xori %9, %56 : vector<8x128xi32>
    %c-1150833019_i32 = arith.constant -1150833019 : i32
    %58 = vector.broadcast %c-1150833019_i32 : i32 to vector<8x128xi32>
    %59 = arith.xori %57, %58 : vector<8x128xi32>
    %c16_i32_10 = arith.constant 16 : i32
    %60 = vector.broadcast %c16_i32_10 : i32 to vector<8x128xi32>
    %61 = arith.shrsi %59, %60 : vector<8x128xi32>
    %c65535_i32_11 = arith.constant 65535 : i32
    %62 = vector.broadcast %c65535_i32_11 : i32 to vector<8x128xi32>
    %63 = arith.andi %61, %62 : vector<8x128xi32>
    %64 = arith.xori %59, %63 : vector<8x128xi32>
    %c2146121005_i32_12 = arith.constant 2146121005 : i32
    %65 = vector.broadcast %c2146121005_i32_12 : i32 to vector<8x128xi32>
    %66 = arith.muli %64, %65 : vector<8x128xi32>
    %c15_i32_13 = arith.constant 15 : i32
    %67 = vector.broadcast %c15_i32_13 : i32 to vector<8x128xi32>
    %68 = arith.shrsi %66, %67 : vector<8x128xi32>
    %c131071_i32_14 = arith.constant 131071 : i32
    %69 = vector.broadcast %c131071_i32_14 : i32 to vector<8x128xi32>
    %70 = arith.andi %68, %69 : vector<8x128xi32>
    %71 = arith.xori %66, %70 : vector<8x128xi32>
    %c-2073254261_i32_15 = arith.constant -2073254261 : i32
    %72 = vector.broadcast %c-2073254261_i32_15 : i32 to vector<8x128xi32>
    %73 = arith.muli %71, %72 : vector<8x128xi32>
    %c16_i32_16 = arith.constant 16 : i32
    %74 = vector.broadcast %c16_i32_16 : i32 to vector<8x128xi32>
    %75 = arith.shrsi %73, %74 : vector<8x128xi32>
    %c65535_i32_17 = arith.constant 65535 : i32
    %76 = vector.broadcast %c65535_i32_17 : i32 to vector<8x128xi32>
    %77 = arith.andi %75, %76 : vector<8x128xi32>
    %78 = arith.xori %73, %77 : vector<8x128xi32>
    %79 = vector.broadcast %10 : i32 to vector<8x128xi32>
    %80 = arith.addi %78, %79 : vector<8x128xi32>
    %c16_i32_18 = arith.constant 16 : i32
    %81 = vector.broadcast %c16_i32_18 : i32 to vector<8x128xi32>
    %82 = arith.shrsi %80, %81 : vector<8x128xi32>
    %c65535_i32_19 = arith.constant 65535 : i32
    %83 = vector.broadcast %c65535_i32_19 : i32 to vector<8x128xi32>
    %84 = arith.andi %82, %83 : vector<8x128xi32>
    %85 = arith.xori %80, %84 : vector<8x128xi32>
    %c2146121005_i32_20 = arith.constant 2146121005 : i32
    %86 = vector.broadcast %c2146121005_i32_20 : i32 to vector<8x128xi32>
    %87 = arith.muli %85, %86 : vector<8x128xi32>
    %c15_i32_21 = arith.constant 15 : i32
    %88 = vector.broadcast %c15_i32_21 : i32 to vector<8x128xi32>
    %89 = arith.shrsi %87, %88 : vector<8x128xi32>
    %c131071_i32_22 = arith.constant 131071 : i32
    %90 = vector.broadcast %c131071_i32_22 : i32 to vector<8x128xi32>
    %91 = arith.andi %89, %90 : vector<8x128xi32>
    %92 = arith.xori %87, %91 : vector<8x128xi32>
    %c-2073254261_i32_23 = arith.constant -2073254261 : i32
    %93 = vector.broadcast %c-2073254261_i32_23 : i32 to vector<8x128xi32>
    %94 = arith.muli %92, %93 : vector<8x128xi32>
    %c16_i32_24 = arith.constant 16 : i32
    %95 = vector.broadcast %c16_i32_24 : i32 to vector<8x128xi32>
    %96 = arith.shrsi %94, %95 : vector<8x128xi32>
    %c65535_i32_25 = arith.constant 65535 : i32
    %97 = vector.broadcast %c65535_i32_25 : i32 to vector<8x128xi32>
    %98 = arith.andi %96, %97 : vector<8x128xi32>
    %99 = arith.xori %94, %98 : vector<8x128xi32>
    %c9_i32 = arith.constant 9 : i32
    %100 = vector.broadcast %c9_i32 : i32 to vector<8x128xi32>
    %101 = arith.shrsi %55, %100 : vector<8x128xi32>
    %c8388607_i32 = arith.constant 8388607 : i32
    %102 = vector.broadcast %c8388607_i32 : i32 to vector<8x128xi32>
    %103 = arith.andi %101, %102 : vector<8x128xi32>
    %c1065353216_i32 = arith.constant 1065353216 : i32
    %104 = vector.broadcast %c1065353216_i32 : i32 to vector<8x128xi32>
    %105 = arith.ori %103, %104 : vector<8x128xi32>
    %106 = tpu.bitcast %105 : vector<8x128xi32> -> vector<8x128xf32>
    %cst = arith.constant 1.000000e+00 : f32
    %107 = vector.broadcast %cst : f32 to vector<8x128xf32>
    %108 = arith.subf %106, %107 : vector<8x128xf32>
    %cst_26 = arith.constant 1.000000e+00 : f32
    %109 = vector.broadcast %cst_26 : f32 to vector<8x128xf32>
    %110 = arith.subf %109, %108 : vector<8x128xf32>
    %c9_i32_27 = arith.constant 9 : i32
    %111 = vector.broadcast %c9_i32_27 : i32 to vector<8x128xi32>
    %112 = arith.shrsi %99, %111 : vector<8x128xi32>
    %c8388607_i32_28 = arith.constant 8388607 : i32
    %113 = vector.broadcast %c8388607_i32_28 : i32 to vector<8x128xi32>
    %114 = arith.andi %112, %113 : vector<8x128xi32>
    %c1065353216_i32_29 = arith.constant 1065353216 : i32
    %115 = vector.broadcast %c1065353216_i32_29 : i32 to vector<8x128xi32>
    %116 = arith.ori %114, %115 : vector<8x128xi32>
    %117 = tpu.bitcast %116 : vector<8x128xi32> -> vector<8x128xf32>
    %cst_30 = arith.constant 1.000000e+00 : f32
    %118 = vector.broadcast %cst_30 : f32 to vector<8x128xf32>
    %119 = arith.subf %117, %118 : vector<8x128xf32>
    %120 = math.log %110 : vector<8x128xf32>
    %cst_31 = arith.constant -2.000000e+00 : f32
    %121 = vector.broadcast %cst_31 : f32 to vector<8x128xf32>
    %122 = arith.mulf %121, %120 : vector<8x128xf32>
    %123 = math.sqrt %122 : vector<8x128xf32>
    %cst_32 = arith.constant 6.28318548 : f32
    %124 = vector.broadcast %cst_32 : f32 to vector<8x128xf32>
    %125 = arith.mulf %124, %119 : vector<8x128xf32>
    %126 = math.cos %125 : vector<8x128xf32>
    %127 = arith.mulf %123, %126 : vector<8x128xf32>
    %c0_33 = arith.constant 0 : index
    %c0_34 = arith.constant 0 : index
    %128 = vector.load %arg3[%c0_33, %c0_34] : memref<16x128xf32, #tpu.memory_space<vmem>>, vector<8x128xf32>
    tpu.vector_store %arg3[%c0_33, %c0_34], %127 {strides = array<i32>} : memref<16x128xf32, #tpu.memory_space<vmem>>, vector<8x128xf32>,
    %129 = math.sin %125 : vector<8x128xf32>
    %130 = arith.mulf %123, %129 : vector<8x128xf32>
    %c8 = arith.constant 8 : index
    %c0_35 = arith.constant 0 : index
    %131 = vector.load %arg3[%c8, %c0_35] : memref<16x128xf32, #tpu.memory_space<vmem>>, vector<8x128xf32>
    tpu.vector_store %arg3[%c8, %c0_35], %130 {strides = array<i32>} : memref<16x128xf32, #tpu.memory_space<vmem>>, vector<8x128xf32>,
    return
  }
  func.func @transform_0(%arg0: i32, %arg1: i32) -> i32 {
    %c0_i32 = arith.constant 0 : i32
    %c0_i32_0 = arith.constant 0 : i32
    return %c0_i32 : i32
  }
  func.func @transform_1(%arg0: i32, %arg1: i32) -> (i32, i32) {
    %c0_i32 = arith.constant 0 : i32
    return %arg0, %arg1 : i32, i32
  }
}

</mosaic_0001>

<bundles_post_ra>
// kernel: _sample_bongard_logits.1
= control target key start
LH: loop header
LB: loop body
LE: loop exit
PB: predicated region body
PF: predicated region fallthrough
CT: control target
= control target key end

     0   :  { %6 = vsyncpa [#allocation3], 0  ;;  %s434_s0 = inlined_call_operand.vmem [shape: s32[2], index: 0, kind: input, shape index: {}]   ;;  %s435_s1 = inlined_call_operand.vmem [shape: f32[16,128], index: 1, kind: output, shape index: {}]  }
   0x1   :  { %s13_s8 = sshll.u32 %s434_s0, 4  ;;  %s14_s8 = int_to_ptr.vmem [resolvable:$true] %s13_s8 }
   0x2   :  { %s367_s9 = scalar_lea.vmem %s14_s8, 16  ;;  %p372_p1 = scmp.lt.s32.totalorder %s14_s8, %s14_s8 }
   0x3   :  { %p368_p0 = scmp.ne.s32.totalorder %s14_s8, %s367_s9  ;;  %p373_p2 = scmp.lt.s32.totalorder %s367_s9, %s367_s9 }
   0x5   :  { %p374_p3 = por %p373_p2, %p372_p1 }
   0x7   :  { %p375_p4 = pnand %p374_p3, %p368_p0 }
   0x9   :  { %378 = shalt.err (!%p375_p4)
}
   0xa   :  { %s381_s10 = smov [#allocation2]  }
   0xb   :  { %16 = dma.vmem_to_smem %s14_s8, 16, %s381_s10, [#allocation3]  }
   0xc   :  { %379 = dma.done.wait [#allocation3], 16  }
   0xd   :  { %380 = vsyncadd [#allocation3], 4294967280 }
   0xe   :  { %20 = sfence }
   0xf   :  { %v23_v0 = vlaneseq  ;;  %s31_s11 = sld [smem:[#allocation2]]  ;;  %s401_s12 = sld [smem:[#allocation2 + $0x1]]  ;;  %v382_v57 = vmov 683565275   ;;  %v383_v59 = vmov 2475754826  }
  0x10   :  { %v384_v61 = vmov 2131351028  }
  0x11   :  { %v24_v1 = vshrl.u32 %v23_v0, 7  ;;  %v26_v2 = vand.u32 127, %v23_v0 }
  0x13   :  { %v27_v3 = vmul.u32 128, %v24_v1 }
  0x15   :  { %v30_v4 = vadd.s32 %v27_v3, %v26_v2  ;;  %v47_v5 = vstv %s401_s12  ;;  %v33_v6 = vstv %s31_s11  ;;  %v385_v2 = vmov 2102212464  }
  0x17   :  { %v34_v7 = vxor.u32 %v33_v6, %v30_v4  ;;  %v60_v8 = vxor.u32 %v47_v5, %v30_v4 }
  0x19   :  { %v35_v9 = vxor.u32 2654435769, %v34_v7  ;;  %v61_v10 = vxor.u32 3144134277, %v60_v8  ;;  %v386_v7 = vmov 920167782  }
  0x1b   :  { %v324_v11 = vshrl.u32 %v35_v9, 16  ;;  %v330_v12 = vshrl.u32 %v61_v10, 16 }
  0x1d   :  { %v38_v13 = vxor.u32 %v324_v11, %v35_v9  ;;  %v64_v14 = vxor.u32 %v330_v12, %v61_v10 }
  0x1f   :  { %v39_v15 = vmul.u32 2146121005, %v38_v13  ;;  %v65_v16 = vmul.u32 2146121005, %v64_v14  ;;  %v387_v13 = vmov 1326507024  }
  0x21   :  { %v331_v17 = vshrl.u32 %v65_v16, 15  ;;  %v325_v18 = vshrl.u32 %v39_v15, 15 }
  0x23   :  { %v68_v19 = vxor.u32 %v331_v17, %v65_v16  ;;  %v42_v21 = vxor.u32 %v325_v18, %v39_v15 }
  0x25   :  { %v69_v20 = vmul.u32 2221713035, %v68_v19  ;;  %v43_v24 = vmul.u32 2221713035, %v42_v21 }
  0x27   :  { %v332_v22 = vshrl.u32 %v69_v20, 16  ;;  %v326_v27 = vshrl.u32 %v43_v24, 16 }
  0x29   :  { %v72_v23 = vxor.u32 %v332_v22, %v69_v20  ;;  %v46_v30 = vxor.u32 %v326_v27, %v43_v24 }
  0x2b   :  { %v73_v25 = vadd.s32 %v72_v23, %v33_v6  ;;  %v48_v33 = vadd.s32 %v47_v5, %v46_v30 }
  0x2d   :  { %v333_v26 = vshrl.u32 %v73_v25, 16  ;;  %v327_v36 = vshrl.u32 %v48_v33, 16 }
  0x2f   :  { %v76_v28 = vxor.u32 %v333_v26, %v73_v25  ;;  %v51_v39 = vxor.u32 %v327_v36, %v48_v33 }
  0x31   :  { %v77_v29 = vmul.u32 2146121005, %v76_v28  ;;  %v52_v42 = vmul.u32 2146121005, %v51_v39 }
  0x33   :  { %v334_v31 = vshrl.u32 %v77_v29, 15  ;;  %v328_v45 = vshrl.u32 %v52_v42, 15 }
  0x35   :  { %v80_v32 = vxor.u32 %v334_v31, %v77_v29  ;;  %v55_v48 = vxor.u32 %v328_v45, %v52_v42 }
  0x37   :  { %v81_v34 = vmul.u32 2221713035, %v80_v32  ;;  %v56_v51 = vmul.u32 2221713035, %v55_v48 }
  0x39   :  { %v335_v35 = vshrl.u32 %v81_v34, 16  ;;  %v329_v63 = vshrl.u32 %v56_v51, 16 }
  0x3b   :  { %v84_v37 = vxor.u32 %v335_v35, %v81_v34  ;;  %v59_v15 = vxor.u32 %v329_v63, %v56_v51 }
  0x3d   :  { %v338_v38 = vshrl.u32 %v84_v37, 9  ;;  %v336_v27 = vshrl.u32 %v59_v15, 9 }
  0x3f   :  { %v93_v40 = vor.u32 1065353216, %v338_v38  ;;  %v87_v37 = vor.u32 1065353216, %v336_v27 }
  0x41   :  { %v339_v41 = vadd.f32 -1.0, %v93_v40 }
  0x43   :  { %v404_v43 = vmul.f32 6.2831855, %v339_v41  ;;  %v337_v41 = vadd.f32 -1.0, %v87_v37 }
  0x45   :  { %v110_v44 = vand.u32 2139095040, %v404_v43  ;;  %v107_v50 = vand.u32 2147483647, %v404_v43  ;;  %v90_v45 = vsub.f32 1.0, %v337_v41  ;;  %vm109_vm7 = vcmp.lt.s32.totalorder %v404_v43, 0 }
  0x47   :  { %v111_v46 = vshrl.u32 %v110_v44, 23  ;;  %v114_v54 = vand.u32 8388607, %v107_v50  ;;  %359 = vlog2.f32 %v90_v45  ;;  %vm108_vm8 = vcmp.le.f32.partialorder %v107_v50, 0.7853982 }
  0x49   :  { %v340_v47 = vadd.s32 4294967169, %v111_v46  ;;  %v115_v5 = vor.u32 8388608, %v114_v54 }
  0x4b   :  { %v117_v49 = vadd.s32 1, %v340_v47  ;;  %v155_v20 = vshll.u32 %v115_v5, 8 }
  0x4d   :  { %vm118_vm0 = vcmp.gt.s32.totalorder %v117_v49, 0 }
  0x4e   :  { %v119_v52 = vsel %vm118_vm0, %v117_v49, 0 }
  0x4f   :  { %v121_v53 = vand.u32 31, %v119_v52  ;;  %v120_v55 = vshrl.u32 %v119_v52, 5 }
  0x51   :  { %v122_v56 = vsub.s32 32, %v121_v53  ;;  %v124_v58 = vshll.u32 %v382_v57, %v121_v53  ;;  %v127_v60 = vshll.u32 %v383_v59, %v121_v53  ;;  %v130_v62 = vshll.u32 %v384_v61, %v121_v53  ;;  %v360_v54 = vpop.eup %359 }
  0x52   :  { %v133_v4 = vshll.u32 %v385_v2, %v121_v53  ;;  %v136_v8 = vshll.u32 %v386_v7, %v121_v53  ;;  %vm139_vm1 = vcmp.lt.s32.totalorder %v120_v55, 1  ;;  %vm142_vm2 = vcmp.lt.s32.totalorder %v120_v55, 4 }
  0x53   :  { %v125_v0 = vshrl.u32 %v383_v59, %v122_v56  ;;  %v128_v1 = vshrl.u32 %v384_v61, %v122_v56  ;;  %v131_v3 = vshrl.u32 %v385_v2, %v122_v56  ;;  %v123_v6 = vshrl.u32 %v382_v57, %v122_v56 }
  0x54   :  { %v134_v12 = vshrl.u32 %v386_v7, %v122_v56  ;;  %v137_v14 = vshrl.u32 %v387_v13, %v122_v56  ;;  %vm141_vm3 = vcmp.lt.s32.totalorder %v120_v55, 3  ;;  %vm140_vm4 = vcmp.lt.s32.totalorder %v120_v55, 2 }
  0x55   :  { %v126_v9 = vor.u32 %v125_v0, %v124_v58  ;;  %v129_v10 = vor.u32 %v128_v1, %v127_v60  ;;  %v132_v11 = vor.u32 %v131_v3, %v130_v62  ;;  %v97_v59 = vmul.f32 0.6931472, %v360_v54 }
  0x56   :  { %v135_v16 = vor.u32 %v134_v12, %v133_v4  ;;  %v138_v18 = vor.u32 %v137_v14, %v136_v8 }
  0x57   :  { %v144_v17 = vsel %vm142_vm2, %v132_v11, 2102212464  ;;  %v147_v19 = vsel %vm139_vm1, %v126_v9, %v129_v10  ;;  %v143_v21 = vsel %vm139_vm1, %v123_v6, %v126_v9  ;;  %v151_v24 = vsel %vm139_vm1, %v129_v10, %v132_v11 }
  0x58   :  { %v145_v22 = vsel %vm141_vm3, %v129_v10, %v144_v17  ;;  %v148_v23 = vsel %vm142_vm2, %v135_v16, 920167782  ;;  %v152_v26 = vsel %vm142_vm2, %v138_v18, 1326507024  ;;  %v98_v0 = vmul.f32 -2.0, %v97_v59 }
  0x59   :  { %v149_v25 = vsel %vm141_vm3, %v132_v11, %v148_v23  ;;  %v153_v29 = vsel %vm141_vm3, %v135_v16, %v152_v26  ;;  %v146_v30 = vsel %vm140_vm4, %v143_v21, %v145_v22  ;;  %vm199_vm1 = vweird.f32 %v404_v43 }
  0x5a   :  { %v150_v28 = vsel %vm140_vm4, %v147_v19, %v149_v25  ;;  %v154_v31 = vsel %vm140_vm4, %v151_v24, %v153_v29  ;;  %v162_v36 = vmul.u32 %v155_v20, %v146_v30  ;;  %361 = vrsqrt.f32 %v98_v0 }
  0x5b   :  { %v413_v32 = vmul.u32.u64.low %v155_v20, %v150_v28  ;;  %v414_v33 = vmul.u32.u64.high %v155_v20, %v150_v28, %v413_v32  ;;  %v416_v34 = vmul.u32.u64.low %v155_v20, %v154_v31  ;;  %v417_v35 = vmul.u32.u64.high %v155_v20, %v154_v31, %v416_v34 }
  0x5c   :  { %vm101_vm9 = vcmp.eq.f32.partialorder %v98_v0, inf  ;;  %vm103_vm10 = vcmp.eq.f32.partialorder %v98_v0, 0.0  ;;  %v104_v17 = vand.u32 2147483648, %v98_v0 }
  0x5d   :  { %v165_v38 = vadd.s32 1, %v414_v33  ;;  %vm164_vm5 = vc.u32 %v417_v35, %v413_v32  ;;  %v163_v53 = vadd.s32 %v413_v32, %v417_v35 }
  0x5f   :  { %v166_v39 = vsel %vm164_vm5, %v165_v38, %v414_v33 }
  0x60   :  { %v167_v40 = vadd.s32 %v166_v39, %v162_v36 }
  0x62   :  { %v168_v42 = vadd.s32 536870912, %v167_v40 }
  0x64   :  { %v169_v44 = vshrl.u32 %v168_v42, 30  ;;  %v362_v12 = vpop.eup %361 }
  0x65   :  { %v100_v15 = vmul.f32 %v362_v12, %v98_v0 }
  0x66   :  { %v170_v46 = vshll.u32 %v169_v44, 30  ;;  %v193_v4 = vsub.s32 4, %v169_v44 }
  0x67   :  { %v102_v18 = vsel %vm101_vm9, %v98_v0, %v100_v15 }
  0x68   :  { %v171_v47 = vsub.s32 %v167_v40, %v170_v46  ;;  %v194_v7 = vsel %vm109_vm7, %v193_v4, %v169_v44  ;;  %v105_v23 = vsel %vm103_vm10, %v104_v17, %v102_v18 }
  0x69   :  { %v196_v10 = vsel %vm108_vm8, 0, %v194_v7 }
  0x6a   :  { %v173_v48 = vsub.s32 0, %v171_v47  ;;  %v305_v11 = vadd.s32 3, %v196_v10  ;;  %v200_v13 = vand.u32 3, %v196_v10 }
  0x6c   :  { %v341_v49 = vmin.u32 %v173_v48, %v171_v47  ;;  %v306_v14 = vand.u32 3, %v305_v11  ;;  %vm205_vm11 = vcmp.eq.s32.totalorder %v200_v13, 2  ;;  %vm202_vm13 = vcmp.eq.s32.totalorder %v200_v13, 0 }
  0x6d   :  { %vm201_vm15 = vcmp.lt.s32.totalorder %v200_v13, 2 }
  0x6e   :  { %v175_v51 = vclz %v341_v49  ;;  %vm311_vm12 = vcmp.eq.s32.totalorder %v306_v14, 2  ;;  %vm308_vm14 = vcmp.eq.s32.totalorder %v306_v14, 0  ;;  %vm307_vm0 = vcmp.lt.s32.totalorder %v306_v14, 2 }
  0x70   :  { %v342_v52 = vadd.s32 4294967294, %v175_v51 }
  0x72   :  { %vm343_vm6 = vcmp.lt.s32.totalorder %v342_v52, 0 }
  0x73   :  { %v178_v55 = vsel %vm343_vm6, 0, %v342_v52 }
  0x74   :  { %v179_v56 = vsub.s32 32, %v178_v55  ;;  %v180_v57 = vshll.u32 %v171_v47, %v178_v55  ;;  %v183_v58 = vsub.s32 4294967266, %v178_v55 }
  0x76   :  { %v181_v60 = vshrl.u32 %v163_v53, %v179_v56  ;;  %v184_v61 = vadd.s32 127, %v183_v58 }
  0x78   :  { %v182_v62 = vor.u32 %v181_v60, %v180_v57  ;;  %v185_v63 = vshll.u32 %v184_v61, 23 }
  0x7a   :  { %v186_v1 = vor.u32 4788187, %v185_v63  ;;  %v189_v2 = vcvt.s32.f32 %v182_v62 }
  0x7c   :  { %v187_v3 = vand.u32 2147483647, %v186_v1 }
  0x7e   :  { %v190_v5 = vmul.f32 %v189_v2, %v187_v3 }
  0x80   :  { %v191_v6 = vxor.u32 2147483648, %v190_v5 }
  0x82   :  { %v192_v8 = vsel %vm109_vm7, %v191_v6, %v190_v5 }
  0x83   :  { %v195_v9 = vsel %vm108_vm8, %v404_v43, %v192_v8 }
  0x84   :  { %363 = vcosq.f32 %v195_v9 }
  0x85   :  { %365 = vsinq.f32 %v195_v9 }
  0x8e   :  { %v364_v16 = vpop.eup %363 }
  0x8f   :  { %v366_v50 = vpop.eup %365  ;;  %v206_v19 = vxor.u32 2147483648, %v364_v16 }
  0x90   :  { %v203_v20 = vxor.u32 2147483648, %v366_v50 }
  0x91   :  { %v207_v21 = vsel %vm205_vm11, %v206_v19, %v366_v50  ;;  %v313_v22 = vsel %vm311_vm12, %v206_v19, %v366_v50 }
  0x92   :  { %v204_v24 = vsel %vm202_vm13, %v364_v16, %v203_v20  ;;  %v310_v25 = vsel %vm308_vm14, %v364_v16, %v203_v20 }
  0x93   :  { %v208_v26 = vsel %vm201_vm15, %v204_v24, %v207_v21  ;;  %v314_v27 = vsel %vm307_vm0, %v310_v25, %v313_v22 }
  0x94   :  { %v209_v28 = vsel %vm199_vm1, nan, %v208_v26  ;;  %v315_v29 = vsel %vm199_vm1, nan, %v314_v27 }
  0x95   :  { %v210_v30 = vmul.f32 %v209_v28, %v105_v23  ;;  %v316_v31 = vmul.f32 %v315_v29, %v105_v23 }
  0x97   :  { %211 = vst [vmem:[%s435_s1] sm:$0xff] %v210_v30  ;;  %317 = vst [vmem:[%s435_s1 + $0x8] sm:$0xff] %v316_v31 }
  0x98   :  { %322 = vsyncpa [#allocation3], 1 }

</bundles_post_ra>
